<compile_context>
chip_gen: v7x
topology: tpu7x:2x2x1
jax: 0.10.0
libtpu: 0.0.40
codegen_flags: <defaults>
</compile_context>

<pallas_src>
import jax
import jax.numpy as jnp
from jax.experimental import pallas as pl
from jax.experimental.pallas import tpu as pltpu

# ---- problem sizes (small, consistent with the module) ----
B, C_IN, H, W = 2, 4, 16, 16
C_OUT, KH, KW = 8, 3, 3
PAD = 1

M_IN = B * H                     # 32  rows of the stacked input/output slab
K_DIM = C_IN * W                 # 64  input slab width  (channel-major)
N_DIM = C_OUT * W                # 128 output slab width (channel-major, lane-dense)
PADH = H + 2 * PAD               # 18  padded rows per batch element
M_PAD = B * PADH                 # 36  rows of the padded scratch (2-row zero seam)
M_MM = M_PAD - (KH - 1)          # 34  rows per banded matmul (seam rows discarded)

# ---- quantization parameters of the QuantStub (deterministic, quint8) ----
# TODO(synk): a real QuantStub observer calibrates scale/zero-point from data;
# here they are fixed constants (modeling choice, matches the reference).
Q_SCALE = 0.05
Q_INV_SCALE = 1.0 / Q_SCALE      # explicit constant -> single vmul
Q_ZERO_POINT = 128.0
Q_MIN, Q_MAX = 0.0, 255.0


def quantnet_kernel(x_ref, w_ref, b_ref, o_ref, pad_ref):
    """Single grid step; both batch elements stacked along sublanes.

    x_ref  : (32, 64)      stacked unpadded input slab, channel-major   (VMEM)
    w_ref  : (3, 64, 128)  block-banded conv weight (one band per kh)   (VMEM)
    b_ref  : (1, 128)      bias, bias[co] repeated over the W columns   (VMEM)
    o_ref  : (32, 128)     stacked lane-dense output slab               (VMEM)
    pad_ref: (36, 64)      vertically padded scratch (zero seam rows)   (VMEM)
    """
    # --- QuantStub: per-tensor affine quantize -> dequantize (quint8) ---
    # Lane-dense (32, 64) view: a handful of vregs of VPU work.
    x = x_ref[...].astype(jnp.float32)
    q = jnp.clip(jnp.round(x * Q_INV_SCALE) + Q_ZERO_POINT, Q_MIN, Q_MAX)
    xdq = (q - Q_ZERO_POINT) * Q_SCALE                       # fake-quantized fp32

    # --- fused vertical zero-padding (padding=1 along H, per batch) ---
    # Scratch rows: [0]=zero, [1..16]=batch0, [17,18]=zero seam,
    #               [19..34]=batch1, [35]=zero.
    pad_ref[...] = jnp.zeros_like(pad_ref)
    pad_ref[pl.ds(PAD, H), :] = xdq[:H]                      # batch 0
    pad_ref[pl.ds(PADH + PAD, H), :] = xdq[H:]               # batch 1

    # --- original_model: Conv2d(C_IN, C_OUT, 3, padding=1) + ReLU ---
    # Conv as KH banded matmuls over the seamed M=34 slab.  Horizontal (W)
    # zero-padding is absorbed into the banded RHS; each LHS is a sublane
    # slice of pad_ref.  Bias is folded into the accumulator init
    # (broadcasts (1,128) -> (34,128)).
    acc = b_ref[...].astype(jnp.float32)
    for kh in range(KH):
        acc = acc + jnp.dot(
            pad_ref[pl.ds(kh, M_MM), :],                     # (34, 64)
            w_ref[kh],                                       # (64, 128)
            preferred_element_type=jnp.float32,
        )
    acc = jnp.maximum(acc, 0.0)                              # ReLU

    # --- DeQuantStub: identity on an already-dequantized fp tensor ---
    # Discard the 2 seam rows; two sublane-aligned, unmasked 128-lane stores.
    o_ref[pl.ds(0, H), :] = acc[0:H].astype(o_ref.dtype)             # batch 0
    o_ref[pl.ds(H, H), :] = acc[PADH:PADH + H].astype(o_ref.dtype)   # batch 1


def _build_banded_weight(w_oihw):
    """OIHW conv weight -> (KH, C_IN*W, C_OUT*W) block-banded matrices.

    Channel-major slab layout:
      bw[kh, ci*W + win, co*W + wcol] = w[co, ci, kh, kw]  with
      kw = win - wcol + PAD, and entries with kw outside [0, KW) are zero
      (this encodes the horizontal zero-padding of the convolution).
    """
    w_hwio = jnp.transpose(w_oihw, (2, 3, 1, 0))             # (KH, KW, C_IN, C_OUT)
    win_idx = jnp.arange(W)
    wcol_idx = jnp.arange(W)
    kw_idx = jnp.arange(KW)
    ind = (win_idx[None, :, None] - wcol_idx[None, None, :] + PAD
           ) == kw_idx[:, None, None]                        # (KW, W, W)
    # banded[kh, ci, win, co, wcol]
    banded = jnp.einsum("kaw,hkio->hiaow", ind.astype(jnp.float32), w_hwio)
    return banded.reshape(KH, C_IN * W, C_OUT * W)           # (3, 64, 128)


@jax.jit
def quantnet_forward(x_nchw, w_oihw, bias):
    """x_nchw: (B, C_IN, H, W) f32; w_oihw: (C_OUT, C_IN, KH, KW); bias: (C_OUT,)."""
    # NCHW -> channel-major stacked slab (B*H, C_IN*W).  W stays the minor
    # (lane) axis through the transpose, so this is cheap layout glue.
    x_slab = jnp.transpose(x_nchw, (0, 2, 1, 3)).reshape(M_IN, K_DIM)
    w_banded = _build_banded_weight(w_oihw)                  # (3, 64, 128)
    b_slab = jnp.repeat(bias, W).reshape(1, N_DIM)           # (1, 128)

    flops = 2 * KH * M_MM * K_DIM * N_DIM
    bytes_accessed = 4 * (M_IN * K_DIM + KH * K_DIM * N_DIM + N_DIM + M_IN * N_DIM)

    out_slab = pl.pallas_call(
        quantnet_kernel,
        out_shape=jax.ShapeDtypeStruct((M_IN, N_DIM), jnp.float32),
        grid=(1,),
        in_specs=[
            pl.BlockSpec((M_IN, K_DIM), lambda i: (0, 0)),
            pl.BlockSpec((KH, K_DIM, N_DIM), lambda i: (0, 0, 0)),
            pl.BlockSpec((1, N_DIM), lambda i: (0, 0)),
        ],
        out_specs=pl.BlockSpec((M_IN, N_DIM), lambda i: (0, 0)),
        scratch_shapes=[pltpu.VMEM((M_PAD, K_DIM), jnp.float32)],
        compiler_params=pltpu.CompilerParams(
            # Single step: no megacore split (per-step work << step overhead).
            dimension_semantics=("arbitrary",),
        ),
        cost_estimate=pl.CostEstimate(
            flops=flops, transcendentals=0, bytes_accessed=bytes_accessed),
    )(x_slab, w_banded, b_slab)

    # (B*H, C_OUT*W) -> NCHW; W again stays the minor axis through the transpose.
    return jnp.transpose(out_slab.reshape(B, H, C_OUT, W), (0, 2, 1, 3))


def _reference(x_nchw, w_oihw, bias):
    """Pure-JAX reference of the same semantics (for a sanity check)."""
    q = jnp.clip(jnp.round(x_nchw * Q_INV_SCALE) + Q_ZERO_POINT, Q_MIN, Q_MAX)
    xdq = (q - Q_ZERO_POINT) * Q_SCALE
    y = jax.lax.conv_general_dilated(
        xdq, w_oihw, window_strides=(1, 1), padding=((PAD, PAD), (PAD, PAD)),
        dimension_numbers=("NCHW", "OIHW", "NCHW"))
    y = y + bias.reshape(1, C_OUT, 1, 1)
    return jnp.maximum(y, 0.0)


if __name__ == "__main__":
    key = jax.random.PRNGKey(0)
    kx, kw, kb = jax.random.split(key, 3)

    x = jax.random.normal(kx, (B, C_IN, H, W), dtype=jnp.float32)
    # Deterministic "Conv2d" parameter init (PyTorch OIHW layout).
    fan_in = C_IN * KH * KW
    bound = 1.0 / (fan_in ** 0.5)
    w = jax.random.uniform(kw, (C_OUT, C_IN, KH, KW), jnp.float32, -bound, bound)
    b = jax.random.uniform(kb, (C_OUT,), jnp.float32, -bound, bound)

    out = quantnet_forward(x, w, b)
    jax.block_until_ready(out)

    ref = _reference(x, w, b)
    assert out.shape == (B, C_OUT, H, W)
    assert jnp.allclose(out, ref, atol=1e-4, rtol=1e-4)

    print("KERNEL_OK")
</pallas_src>

<mosaic_0001>
module attributes {stable_mosaic.version = 11 : i64} {
  func.func @quantnet_kernel(%arg0: i32, %arg1: memref<32x64xf32, #tpu.memory_space<vmem>>, %arg2: memref<3x64x128xf32, #tpu.memory_space<vmem>>, %arg3: memref<1x128xf32, #tpu.memory_space<vmem>>, %arg4: memref<32x128xf32, #tpu.memory_space<vmem>>, %arg5: memref<36x64xf32, #tpu.memory_space<vmem>>) attributes {dimension_semantics = [#tpu.dimension_semantics<arbitrary>], iteration_bounds = array<i64: 1>, scalar_prefetch = 0 : i64, scratch_operands = 1 : i64, tpu.core_type = #tpu.core_type<tc>, window_params = [{pipeline_mode = #tpu.pipeline_mode<synchronous>, transform_indices = @transform_0, window_bounds = array<i64: 32, 64>}, {pipeline_mode = #tpu.pipeline_mode<synchronous>, transform_indices = @transform_1, window_bounds = array<i64: 3, 64, 128>}, {pipeline_mode = #tpu.pipeline_mode<synchronous>, transform_indices = @transform_2, window_bounds = array<i64: 1, 128>}, {pipeline_mode = #tpu.pipeline_mode<synchronous>, transform_indices = @transform_3, window_bounds = array<i64: 32, 128>}]} {
    %c0 = arith.constant 0 : index
    %c0_0 = arith.constant 0 : index
    %0 = vector.load %arg1[%c0, %c0_0] : memref<32x64xf32, #tpu.memory_space<vmem>>, vector<32x64xf32>
    %cst = arith.constant 2.000000e+01 : f32
    %1 = vector.broadcast %cst : f32 to vector<32x64xf32>
    %2 = arith.mulf %0, %1 : vector<32x64xf32>
    %3 = math.roundeven %2 : vector<32x64xf32>
    %cst_1 = arith.constant 1.280000e+02 : f32
    %4 = vector.broadcast %cst_1 : f32 to vector<32x64xf32>
    %5 = arith.addf %3, %4 : vector<32x64xf32>
    %cst_2 = arith.constant 0.000000e+00 : f32
    %cst_3 = arith.constant 2.550000e+02 : f32
    %6 = vector.broadcast %cst_2 : f32 to vector<32x64xf32>
    %7 = arith.maximumf %6, %5 : vector<32x64xf32>
    %8 = vector.broadcast %cst_3 : f32 to vector<32x64xf32>
    %9 = arith.minimumf %8, %7 : vector<32x64xf32>
    %cst_4 = arith.constant 1.280000e+02 : f32
    %10 = vector.broadcast %cst_4 : f32 to vector<32x64xf32>
    %11 = arith.subf %9, %10 : vector<32x64xf32>
    %cst_5 = arith.constant 5.000000e-02 : f32
    %12 = vector.broadcast %cst_5 : f32 to vector<32x64xf32>
    %13 = arith.mulf %11, %12 : vector<32x64xf32>
    %cst_6 = arith.constant 0.000000e+00 : f32
    %14 = vector.broadcast %cst_6 : f32 to vector<36x64xf32>
    %c0_7 = arith.constant 0 : index
    %c0_8 = arith.constant 0 : index
    %15 = vector.load %arg5[%c0_7, %c0_8] : memref<36x64xf32, #tpu.memory_space<vmem>>, vector<36x64xf32>
    tpu.vector_store %arg5[%c0_7, %c0_8], %14 {strides = array<i32>} : memref<36x64xf32, #tpu.memory_space<vmem>>, vector<36x64xf32>,
    %16 = vector.extract_strided_slice %13 {offsets = [0, 0], sizes = [16, 64], strides = [1, 1]} : vector<32x64xf32> to vector<16x64xf32>
    %c1 = arith.constant 1 : index
    %c0_9 = arith.constant 0 : index
    %17 = vector.load %arg5[%c1, %c0_9] : memref<36x64xf32, #tpu.memory_space<vmem>>, vector<16x64xf32>
    tpu.vector_store %arg5[%c1, %c0_9], %16 {strides = array<i32>} : memref<36x64xf32, #tpu.memory_space<vmem>>, vector<16x64xf32>,
    %18 = vector.extract_strided_slice %13 {offsets = [16, 0], sizes = [16, 64], strides = [1, 1]} : vector<32x64xf32> to vector<16x64xf32>
    %c19 = arith.constant 19 : index
    %c0_10 = arith.constant 0 : index
    %19 = vector.load %arg5[%c19, %c0_10] : memref<36x64xf32, #tpu.memory_space<vmem>>, vector<16x64xf32>
    tpu.vector_store %arg5[%c19, %c0_10], %18 {strides = array<i32>} : memref<36x64xf32, #tpu.memory_space<vmem>>, vector<16x64xf32>,
    %c0_11 = arith.constant 0 : index
    %c0_12 = arith.constant 0 : index
    %20 = vector.load %arg3[%c0_11, %c0_12] : memref<1x128xf32, #tpu.memory_space<vmem>>, vector<1x128xf32>
    %c0_13 = arith.constant 0 : index
    %c0_14 = arith.constant 0 : index
    %21 = vector.load %arg5[%c0_13, %c0_14] : memref<36x64xf32, #tpu.memory_space<vmem>>, vector<34x64xf32>
    %c0_15 = arith.constant 0 : index
    %c0_16 = arith.constant 0 : index
    %c0_17 = arith.constant 0 : index
    %22 = vector.load %arg2[%c0_15, %c0_16, %c0_17] : memref<3x64x128xf32, #tpu.memory_space<vmem>>, vector<1x64x128xf32>
    %23 = vector.shape_cast %22 : vector<1x64x128xf32> to vector<64x128xf32>
    %cst_18 = arith.constant dense<0.000000e+00> : vector<34x128xf32>
    %24 = tpu.matmul %21, %23, %cst_18 {dimension_numbers = #tpu.dot_dimension_numbers<[1], [0], [0], [1], [0, 0, 1, 1], [], []>} : vector<34x64xf32>, vector<64x128xf32>, vector<34x128xf32> -> vector<34x128xf32>
    %25 = vector.broadcast %20 : vector<1x128xf32> to vector<34x128xf32>
    %26 = arith.addf %25, %24 : vector<34x128xf32>
    %c1_19 = arith.constant 1 : index
    %c0_20 = arith.constant 0 : index
    %27 = vector.load %arg5[%c1_19, %c0_20] : memref<36x64xf32, #tpu.memory_space<vmem>>, vector<34x64xf32>
    %c1_21 = arith.constant 1 : index
    %c0_22 = arith.constant 0 : index
    %c0_23 = arith.constant 0 : index
    %28 = vector.load %arg2[%c1_21, %c0_22, %c0_23] : memref<3x64x128xf32, #tpu.memory_space<vmem>>, vector<1x64x128xf32>
    %29 = vector.shape_cast %28 : vector<1x64x128xf32> to vector<64x128xf32>
    %cst_24 = arith.constant dense<0.000000e+00> : vector<34x128xf32>
    %30 = tpu.matmul %27, %29, %cst_24 {dimension_numbers = #tpu.dot_dimension_numbers<[1], [0], [0], [1], [0, 0, 1, 1], [], []>} : vector<34x64xf32>, vector<64x128xf32>, vector<34x128xf32> -> vector<34x128xf32>
    %31 = arith.addf %26, %30 : vector<34x128xf32>
    %c2 = arith.constant 2 : index
    %c0_25 = arith.constant 0 : index
    %32 = vector.load %arg5[%c2, %c0_25] : memref<36x64xf32, #tpu.memory_space<vmem>>, vector<34x64xf32>
    %c2_26 = arith.constant 2 : index
    %c0_27 = arith.constant 0 : index
    %c0_28 = arith.constant 0 : index
    %33 = vector.load %arg2[%c2_26, %c0_27, %c0_28] : memref<3x64x128xf32, #tpu.memory_space<vmem>>, vector<1x64x128xf32>
    %34 = vector.shape_cast %33 : vector<1x64x128xf32> to vector<64x128xf32>
    %cst_29 = arith.constant dense<0.000000e+00> : vector<34x128xf32>
    %35 = tpu.matmul %32, %34, %cst_29 {dimension_numbers = #tpu.dot_dimension_numbers<[1], [0], [0], [1], [0, 0, 1, 1], [], []>} : vector<34x64xf32>, vector<64x128xf32>, vector<34x128xf32> -> vector<34x128xf32>
    %36 = arith.addf %31, %35 : vector<34x128xf32>
    %cst_30 = arith.constant 0.000000e+00 : f32
    %37 = vector.broadcast %cst_30 : f32 to vector<34x128xf32>
    %38 = arith.maximumf %36, %37 : vector<34x128xf32>
    %39 = vector.extract_strided_slice %38 {offsets = [0, 0], sizes = [16, 128], strides = [1, 1]} : vector<34x128xf32> to vector<16x128xf32>
    %c0_31 = arith.constant 0 : index
    %c0_32 = arith.constant 0 : index
    %40 = vector.load %arg4[%c0_31, %c0_32] : memref<32x128xf32, #tpu.memory_space<vmem>>, vector<16x128xf32>
    tpu.vector_store %arg4[%c0_31, %c0_32], %39 {strides = array<i32>} : memref<32x128xf32, #tpu.memory_space<vmem>>, vector<16x128xf32>,
    %41 = vector.extract_strided_slice %38 {offsets = [18, 0], sizes = [16, 128], strides = [1, 1]} : vector<34x128xf32> to vector<16x128xf32>
    %c16 = arith.constant 16 : index
    %c0_33 = arith.constant 0 : index
    %42 = vector.load %arg4[%c16, %c0_33] : memref<32x128xf32, #tpu.memory_space<vmem>>, vector<16x128xf32>
    tpu.vector_store %arg4[%c16, %c0_33], %41 {strides = array<i32>} : memref<32x128xf32, #tpu.memory_space<vmem>>, vector<16x128xf32>,
    return
  }
  func.func @transform_0(%arg0: i32) -> (i32, i32) {
    %c0_i32 = arith.constant 0 : i32
    %c0_i32_0 = arith.constant 0 : i32
    %c0_i32_1 = arith.constant 0 : i32
    return %c0_i32, %c0_i32_0 : i32, i32
  }
  func.func @transform_1(%arg0: i32) -> (i32, i32, i32) {
    %c0_i32 = arith.constant 0 : i32
    %c0_i32_0 = arith.constant 0 : i32
    %c0_i32_1 = arith.constant 0 : i32
    %c0_i32_2 = arith.constant 0 : i32
    return %c0_i32, %c0_i32_0, %c0_i32_1 : i32, i32, i32
  }
  func.func @transform_2(%arg0: i32) -> (i32, i32) {
    %c0_i32 = arith.constant 0 : i32
    %c0_i32_0 = arith.constant 0 : i32
    %c0_i32_1 = arith.constant 0 : i32
    return %c0_i32, %c0_i32_0 : i32, i32
  }
  func.func @transform_3(%arg0: i32) -> (i32, i32) {
    %c0_i32 = arith.constant 0 : i32
    %c0_i32_0 = arith.constant 0 : i32
    %c0_i32_1 = arith.constant 0 : i32
    return %c0_i32, %c0_i32_0 : i32, i32
  }
}

</mosaic_0001>

<bundles_post_ra>
// kernel: quantnet_forward.1
= control target key start
LH: loop header
LB: loop body
LE: loop exit
PB: predicated region body
PF: predicated region fallthrough
CT: control target
= control target key end

     0   :  { %vm46_vm0 = vcmask 523264   ;;  %v686_v0 = vmov 0.0|0.0   ;;  %v687_v4 = vmov 0.0   ;;  %vm51_vm1 = vcmask 519168   ;;  %s885_s1 = inlined_call_operand.vmem [shape: f32[3,64,128], index: 1, kind: input, shape index: {}]   ;;  %s886_s0 = inlined_call_operand.vmem [shape: f32[32,64], index: 0, kind: input, shape index: {}]   ;;  %s887_s2 = inlined_call_operand.vmem [shape: f32[1,128], index: 2, kind: input, shape index: {}]   ;;  %s888_s3 = inlined_call_operand.vmem [shape: f32[32,128], index: 3, kind: output, shape index: {}]  }
   0x1   :  { %629 = vmatprep.subr.bf16.mxu0 %v686_v0  ;;  %617 = vmatprep.subr.bf16.mxu1 %v686_v0  ;;  %v459_v1 = vld [vmem:[%s885_s1 + $0x40] sm:$0xff]  ;;  %v460_v2 = vld [vmem:[%s885_s1 + $0x48] sm:$0xff]  ;;  %47 = vst.msk [vmem:[#allocation2] sm:$0xff] %vm46_vm0, %v687_v4  ;;  %48 = vst.msk [vmem:[#allocation2 + $0x8] sm:$0xff] %vm46_vm0, %v687_v4  ;;  %vm688_vm2 = vmmov 0  }
   0x2   :  { %v63_v3 = vld [vmem:[%s885_s1] sm:$0xff]  ;;  %49 = vst.msk [vmem:[#allocation2 + $0x10] sm:$0xff] %vm46_vm0, %v687_v4  ;;  %50 = vst.msk [vmem:[#allocation2 + $0x18] sm:$0xff] %vm46_vm0, %v687_v4  ;;  %v630_v5 = vpack.c.bf16 %v460_v2, %v459_v1  ;;  %v64_v6 = vld [vmem:[%s885_s1 + $0x8] sm:$0xff]  ;;  %540 = vmatprep.mubr.msk.f32.mxu1 %vm688_vm2, %v687_v4  ;;  %571 = vmatprep.mubr.msk.f32.mxu0 %vm688_vm2, %v687_v4 }
   0x3   :  { %v461_v7 = vld [vmem:[%s885_s1 + $0x50] sm:$0xff]  ;;  %v462_v8 = vld [vmem:[%s885_s1 + $0x58] sm:$0xff]  ;;  %52 = vst.msk [vmem:[#allocation2 + $0x20] sm:$0xf] %vm51_vm1, %v687_v4  ;;  %v618_v9 = vpack.c.bf16 %v64_v6, %v63_v3  ;;  %v463_v14 = vld [vmem:[%s885_s1 + $0x60] sm:$0xff] }
   0x4   :  { %v65_v10 = vld [vmem:[%s885_s1 + $0x10] sm:$0xff]  ;;  %v66_v11 = vld [vmem:[%s885_s1 + $0x18] sm:$0xff]  ;;  %631 = vmatpush3.bf16.msra.mxu0 %v630_v5  ;;  %v633_v12 = vpack.c.bf16 %v462_v8, %v461_v7  ;;  %v464_v15 = vld [vmem:[%s885_s1 + $0x68] sm:$0xff] }
   0x5   :  { %619 = vmatpush3.bf16.msra.mxu1 %v618_v9  ;;  %632 = vmatprep.subr.bf16.mxu0 %v686_v0  ;;  %v621_v13 = vpack.c.bf16 %v66_v11, %v65_v10  ;;  %v67_v16 = vld [vmem:[%s885_s1 + $0x20] sm:$0xff]  ;;  %v68_v17 = vld [vmem:[%s885_s1 + $0x28] sm:$0xff]  ;;  %v636_v21 = vpack.c.bf16 %v464_v15, %v463_v14  ;;  %v16_v23 = vld [vmem:[%s886_s0 + $0x10] sm:$0xff] }
   0x6   :  { %620 = vmatprep.subr.bf16.mxu1 %v686_v0  ;;  %v14_v18 = vld [vmem:[%s886_s0] sm:$0xff]  ;;  %v15_v20 = vld [vmem:[%s886_s0 + $0x8] sm:$0xff]  ;;  %v624_v24 = vpack.c.bf16 %v68_v17, %v67_v16  ;;  %v465_v25 = vld [vmem:[%s885_s1 + $0x70] sm:$0xff]  ;;  %v20_v28 = vmul.f32 20.0, %v16_v23 }
   0x7   :  { %v18_v19 = vmul.f32 20.0, %v14_v18  ;;  %v19_v22 = vmul.f32 20.0, %v15_v20  ;;  %v466_v26 = vld [vmem:[%s885_s1 + $0x78] sm:$0xff]  ;;  %v69_v30 = vld [vmem:[%s885_s1 + $0x30] sm:$0xff]  ;;  %v472_v58 = vld [vmem:[%s885_s1 + $0x80] sm:$0xff] }
   0x8   :  { %634 = vmatpush3.bf16.msra.mxu0 %v633_v12  ;;  %v17_v29 = vld [vmem:[%s886_s0 + $0x18] sm:$0xff]  ;;  %v681_v35 = vround.rtne.f32 %v20_v28  ;;  %v639_v36 = vpack.c.bf16 %v466_v26, %v465_v25  ;;  %v473_v59 = vld [vmem:[%s885_s1 + $0x88] sm:$0xff]  ;;  %v474_v61 = vld [vmem:[%s885_s1 + $0x90] sm:$0xff] }
   0x9   :  { %622 = vmatpush3.bf16.msra.mxu1 %v621_v13  ;;  %635 = vmatprep.subr.bf16.mxu0 %v686_v0  ;;  %v679_v27 = vround.rtne.f32 %v18_v19  ;;  %v70_v31 = vld [vmem:[%s885_s1 + $0x38] sm:$0xff]  ;;  %v680_v32 = vround.rtne.f32 %v19_v22  ;;  %v21_v33 = vmul.f32 20.0, %v17_v29  ;;  %v642_v60 = vpack.c.bf16 %v473_v59, %v472_v58  ;;  %v476_v6 = vld [vmem:[%s885_s1 + $0xa0] sm:$0xff]  ;;  %v477_v7 = vld [vmem:[%s885_s1 + $0xa8] sm:$0xff] }
   0xa   :  { %623 = vmatprep.subr.bf16.mxu1 %v686_v0  ;;  %v627_v39 = vpack.c.bf16 %v70_v31, %v69_v30  ;;  %v28_v41 = vadd.f32 128.0, %v681_v35  ;;  %v475_v62 = vld [vmem:[%s885_s1 + $0x98] sm:$0xff]  ;;  %v648_v10 = vpack.c.bf16 %v477_v7, %v476_v6  ;;  %v478_v11 = vld [vmem:[%s885_s1 + $0xb0] sm:$0xff]  ;;  %v458_v28 = vld [vmem:[%s887_s2] ss:$0 sm:$0xff] }
   0xb   :  { %v26_v34 = vadd.f32 128.0, %v679_v27  ;;  %v27_v37 = vadd.f32 128.0, %v680_v32  ;;  %v682_v38 = vround.rtne.f32 %v21_v33  ;;  %v645_v5 = vpack.c.bf16 %v475_v62, %v474_v61  ;;  %v479_v12 = vld [vmem:[%s885_s1 + $0xb8] sm:$0xff] }
   0xc   :  { %637 = vmatpush3.bf16.msra.mxu0 %v636_v21  ;;  %v32_v45 = vmax.f32 %v28_v41, 0.0  ;;  %v651_v15 = vpack.c.bf16 %v479_v12, %v478_v11 }
   0xd   :  { %625 = vmatpush3.bf16.msra.mxu1 %v624_v24  ;;  %638 = vmatprep.subr.bf16.mxu0 %v686_v0  ;;  %v30_v40 = vmax.f32 %v26_v34, 0.0  ;;  %v31_v42 = vmax.f32 %v27_v37, 0.0  ;;  %v29_v43 = vadd.f32 128.0, %v682_v38 }
   0xe   :  { %626 = vmatprep.subr.bf16.mxu1 %v686_v0  ;;  %v36_v49 = vmin.f32 %v32_v45, 255.0 }
   0xf   :  { %v34_v44 = vmin.f32 %v30_v40, 255.0  ;;  %v35_v46 = vmin.f32 %v31_v42, 255.0  ;;  %v33_v47 = vmax.f32 %v29_v43, 0.0 }
  0x10   :  { %640 = vmatpush3.bf16.msra.mxu0 %v639_v36  ;;  %v451_v53 = vadd.f32 -128.0, %v36_v49 }
  0x11   :  { %628 = vmatpush3.bf16.msra.mxu1 %v627_v39  ;;  %641 = vmatprep.subr.bf16.mxu0 %v686_v0  ;;  %v449_v48 = vadd.f32 -128.0, %v34_v44  ;;  %v450_v50 = vadd.f32 -128.0, %v35_v46  ;;  %v37_v51 = vmin.f32 %v33_v47, 255.0 }
  0x12   :  { %653 = vmatprep.subr.bf16.mxu1 %v686_v0  ;;  %v44_v56 = vmul.f32 0.05, %v451_v53 }
  0x13   :  { %v42_v52 = vmul.f32 0.05, %v449_v48  ;;  %v43_v54 = vmul.f32 0.05, %v450_v50  ;;  %v452_v55 = vadd.f32 -128.0, %v37_v51 }
  0x14   :  { %55 = vst.msk [vmem:[#allocation2 + $0x13] sm:$0xff] %vm46_vm0, %v44_v56 }
  0x15   :  { %53 = vst.msk [vmem:[#allocation2 + $0x1] sm:$0xff] %vm46_vm0, %v42_v52  ;;  %54 = vst.msk [vmem:[#allocation2 + $0x9] sm:$0xff] %vm46_vm0, %v43_v54  ;;  %v45_v57 = vmul.f32 0.05, %v452_v55 }
  0x17   :  { %56 = vst.msk [vmem:[#allocation2 + $0x1b] sm:$0xff] %vm46_vm0, %v45_v57 }
  0x1b   :  { %v189_v9 = vld [vmem:[#allocation2 + $0x11] sm:$0xff] }
  0x1c   :  { %v58_v63 = vld [vmem:[#allocation2] sm:$0xff]  ;;  %v59_v2 = vld [vmem:[#allocation2 + $0x8] sm:$0xff]  ;;  %v60_v8 = vld [vmem:[#allocation2 + $0x10] sm:$0xff] }
  0x1d   :  { %v187_v1 = vld [vmem:[#allocation2 + $0x1] sm:$0xff]  ;;  %541 = vmatmul.mubr.msk.f32.vlgmr.msra.gmra.mrb[0].mxu1 %vm46_vm0, %v58_v63  ;;  %v188_v3 = vld [vmem:[#allocation2 + $0x9] sm:$0xff]  ;;  %v313_v21 = vld [vmem:[#allocation2 + $0x12] sm:$0xff] }
  0x1e   :  { %572 = vmatmul.mubr.msk.f32.vlgmr.msra.gmra.mrb[0].mxu0 %vm46_vm0, %v187_v1  ;;  %543 = vmatprep.mubr.msk.f32.mxu1 %vm688_vm2, %v687_v4  ;;  %v61_v13 = vld [vmem:[#allocation2 + $0x18] sm:$0xff]  ;;  %v62_v16 = vld [vmem:[#allocation2 + $0x20] sm:$0x3]  ;;  %v312_v19 = vld [vmem:[#allocation2 + $0xa] sm:$0xff] }
  0x1f   :  { %643 = vmatpush3.bf16.msra.mxu0 %v642_v60  ;;  %574 = vmatprep.mubr.msk.f32.mxu0 %vm688_vm2, %v687_v4  ;;  %v190_v14 = vld [vmem:[#allocation2 + $0x19] sm:$0xff]  ;;  %v191_v17 = vld [vmem:[#allocation2 + $0x21] sm:$0x3] }
  0x20   :  { %657 = vmatpush3.bf16.msra.mxu1 %v642_v60  ;;  %644 = vmatprep.subr.bf16.mxu0 %v686_v0  ;;  %v314_v18 = vld [vmem:[#allocation2 + $0x1a] sm:$0xff]  ;;  %v315_v20 = vld [vmem:[#allocation2 + $0x22] sm:$0x3] }
  0x21   :  { %654 = vmatprep.subr.bf16.mxu1 %v686_v0  ;;  %544 = vmatmul.mubr.msk.f32.gmra.mrb[2].mxu1 %vm46_vm0, %v59_v2 }
  0x22   :  { %575 = vmatmul.mubr.msk.f32.gmra.mrb[2].mxu0 %vm46_vm0, %v188_v3  ;;  %546 = vmatprep.mubr.msk.f32.mxu1 %vm688_vm2, %v687_v4 }
  0x23   :  { %646 = vmatpush3.bf16.msra.mxu0 %v645_v5  ;;  %577 = vmatprep.mubr.msk.f32.mxu0 %vm688_vm2, %v687_v4 }
  0x24   :  { %658 = vmatpush3.bf16.msra.mxu1 %v645_v5  ;;  %647 = vmatprep.subr.bf16.mxu0 %v686_v0 }
  0x25   :  { %655 = vmatprep.subr.bf16.mxu1 %v686_v0  ;;  %547 = vmatmul.mubr.msk.f32.gmra.mrb[4].mxu1 %vm46_vm0, %v60_v8 }
  0x26   :  { %578 = vmatmul.mubr.msk.f32.gmra.mrb[4].mxu0 %vm46_vm0, %v189_v9  ;;  %549 = vmatprep.mubr.msk.f32.mxu1 %vm688_vm2, %v687_v4 }
  0x27   :  { %649 = vmatpush3.bf16.msra.mxu0 %v648_v10  ;;  %580 = vmatprep.mubr.msk.f32.mxu0 %vm688_vm2, %v687_v4 }
  0x28   :  { %659 = vmatpush3.bf16.msra.mxu1 %v648_v10  ;;  %650 = vmatprep.subr.bf16.mxu0 %v686_v0 }
  0x29   :  { %656 = vmatprep.subr.bf16.mxu1 %v686_v0  ;;  %550 = vmatmul.mubr.msk.f32.gmra.mrb[6].mxu1 %vm46_vm0, %v61_v13  ;;  %v311_v0 = vld [vmem:[#allocation2 + $0x2] sm:$0xff] }
  0x2a   :  { %581 = vmatmul.mubr.msk.f32.gmra.mrb[6].mxu0 %vm46_vm0, %v190_v14  ;;  %552 = vmatprep.mubr.msk.f32.mxu1 %vm688_vm2, %v687_v4 }
  0x2b   :  { %583 = vmatprep.mubr.msk.f32.mxu0 %vm688_vm2, %v687_v4  ;;  %652 = vmatpush3.bf16.msra.mxu0 %v651_v15 }
  0x2c   :  { %660 = vmatpush3.bf16.msra.mxu1 %v651_v15 }
  0x2d   :  { %553 = vmatmul.mubr.msk.f32.gmra.mrb[8].mxu1 %vm46_vm0, %v62_v16 }
  0x2e   :  { %584 = vmatmul.mubr.msk.f32.gmra.mrb[8].mxu0 %vm46_vm0, %v191_v17  ;;  %611 = vmatprep.mubr.msk.f32.mxu1 %vm688_vm2, %v687_v4 }
  0x2f   :  { %602 = vmatprep.mubr.msk.f32.mxu0 %vm688_vm2, %v687_v4 }
  0x31   :  { %612 = vmatmul.mubr.msk.f32.vlgmr.msra.gmra.mrb[10].mxu1 %vm46_vm0, %v314_v18 }
  0x32   :  { %603 = vmatmul.mubr.msk.f32.vlgmr.msra.gmra.mrb[0].mxu0 %vm46_vm0, %v311_v0  ;;  %614 = vmatprep.mubr.msk.f32.mxu1 %vm688_vm2, %v687_v4 }
  0x33   :  { %605 = vmatprep.mubr.msk.f32.mxu0 %vm688_vm2, %v687_v4 }
  0x35   :  { %615 = vmatmul.mubr.msk.f32.gmra.mrb[12].mxu1 %vm46_vm0, %v315_v20 }
  0x36   :  { %606 = vmatmul.mubr.msk.f32.gmra.mrb[2].mxu0 %vm46_vm0, %v312_v19 }
  0x37   :  { %608 = vmatprep.mubr.msk.f32.mxu0 %vm688_vm2, %v687_v4 }
  0x3a   :  { %609 = vmatmul.mubr.msk.f32.gmra.mrb[4].mxu0 %vm46_vm0, %v313_v21 }
  0xf0   :  { %v152_v22 = vpop.f32.mrb[0].mxu1 }
  0xf1   :  { %v542_v23 = vpop.f32.mrb[1].mxu1  ;;  %v182_v39 = vadd.f32 %v458_v28, %v152_v22 }
  0xf4   :  { %v157_v24 = vpop.f32.mrb[2].mxu1 }
  0xf5   :  { %v545_v25 = vpop.f32.mrb[3].mxu1  ;;  %v183_v47 = vadd.f32 %v458_v28, %v157_v24 }
  0xf8   :  { %v162_v26 = vpop.f32.mrb[4].mxu1 }
  0xf9   :  { %v548_v27 = vpop.f32.mrb[5].mxu1  ;;  %v184_v56 = vadd.f32 %v458_v28, %v162_v26 }
  0xfc   :  { %v167_v29 = vpop.f32.mrb[6].mxu1 }
  0xfd   :  { %v297_v30 = vpop.f32.mrb[6].mxu0  ;;  %v185_v31 = vadd.f32 %v458_v28, %v167_v29  ;;  %v551_v33 = vpop.f32.mrb[7].mxu1 }
  0xfe   :  { %v582_v32 = vpop.f32.mrb[7].mxu0 }
  0xff   :  { %v309_v34 = vadd.f32 %v297_v30, %v185_v31 }
 0x100   :  { %v172_v4 = vpop.f32.mrb[8].mxu1 }
 0x101   :  { %v302_v35 = vpop.f32.mrb[8].mxu0  ;;  %v186_v36 = vadd.f32 %v458_v28, %v172_v4  ;;  %v554_v38 = vpop.f32.mrb[9].mxu1 }
 0x102   :  { %v585_v37 = vpop.f32.mrb[9].mxu0 }
 0x103   :  { %v310_v40 = vadd.f32 %v302_v35, %v186_v36 }
 0x104   :  { %v421_v42 = vpop.f32.mrb[10].mxu1 }
 0x105   :  { %v406_v41 = vpop.f32.mrb[0].mxu0  ;;  %v433_v44 = vadd.f32 %v421_v42, %v309_v34  ;;  %v613_v46 = vpop.f32.mrb[11].mxu1 }
 0x106   :  { %v662_v43 = vadd.f32 %v406_v41, %v182_v39  ;;  %v604_v45 = vpop.f32.mrb[1].mxu0 }
 0x107   :  { %v438_v49 = vmax.f32 %v433_v44, 0.0 }
 0x108   :  { %v435_v48 = vmax.f32 %v662_v43, 0.0  ;;  %v426_v51 = vpop.f32.mrb[12].mxu1 }
 0x109   :  { %v411_v50 = vpop.f32.mrb[2].mxu0  ;;  %443 = vst [vmem:[%s888_s3 + $0x16] sm:$0xff] %v438_v49  ;;  %v434_v53 = vadd.f32 %v426_v51, %v310_v40  ;;  %v616_v55 = vpop.f32.mrb[13].mxu1 }
 0x10a   :  { %440 = vst [vmem:[%s888_s3] sm:$0xff] %v435_v48  ;;  %v664_v52 = vadd.f32 %v411_v50, %v183_v47  ;;  %v607_v54 = vpop.f32.mrb[3].mxu0 }
 0x10b   :  { %v439_v58 = vmax.f32 %v434_v53, 0.0 }
 0x10c   :  { %v436_v57 = vmax.f32 %v664_v52, 0.0 }
 0x10d   :  { %v416_v59 = vpop.f32.mrb[4].mxu0  ;;  %444 = vst [vmem:[%s888_s3 + $0x1e] sm:$0x3] %v439_v58 }
 0x10e   :  { %441 = vst [vmem:[%s888_s3 + $0x8] sm:$0xff] %v436_v57  ;;  %v666_v60 = vadd.f32 %v416_v59, %v184_v56  ;;  %v610_v61 = vpop.f32.mrb[5].mxu0 }
 0x110   :  { %v437_v62 = vmax.f32 %v666_v60, 0.0 }
 0x112   :  { %442 = vst [vmem:[%s888_s3 + $0xe] sm:$0xfc] %v437_v62 }

</bundles_post_ra>
